<compile_context>
chip_gen: v7x
topology: tpu7x:2x2x1
jax: 0.10.0
libtpu: 0.0.40
codegen_flags: <defaults>
</compile_context>

<pallas_src>
import functools

import jax
import jax.numpy as jnp
from jax import lax
from jax.experimental import pallas as pl
from jax.experimental.pallas import tpu as pltpu


_VMEM_LIMIT_BYTES = 64 << 20   # explicit scoped-VMEM cap (actual use is a few MiB)


def _round_up(x: int, m: int) -> int:
    return ((x + m - 1) // m) * m


# ----------------------------------------------------------------------------
# Kernel A: zero-shot text weights.
#   Grid: (C_pad // tc, T), T innermost reduction.
#   templates: (T, C_pad, F_pad) bf16, block (1, tc, F_pad)
#   w_txt:     (F_pad, D)        bf16, resident
#   out:       (C_pad, D)        bf16 per-class unit-norm embeddings
#   scratch:   (tc, D) f32 accumulator (sum of per-template normalized emb.)
# ----------------------------------------------------------------------------
def _text_weights_kernel(toks_ref, w_ref, o_ref, acc_ref):
    t = pl.program_id(1)
    nt = pl.num_programs(1)

    @pl.when(t == 0)
    def _():
        acc_ref[...] = jnp.zeros_like(acc_ref)

    # (tc, F_pad) bf16 @ (F_pad, D) bf16 -> (tc, D) f32 on the MXU.
    e = jnp.dot(toks_ref[0], w_ref[...], preferred_element_type=jnp.float32)
    # F.normalize(..., dim=-1): rsqrt -> EUP slot, no divides. The clamp only
    # protects zero-padded fake classes (real rows are unaffected).
    inv = lax.rsqrt(jnp.maximum(jnp.sum(e * e, axis=-1, keepdims=True), 1e-24))
    acc_ref[...] += e * inv

    @pl.when(t == nt - 1)
    def _():
        cls = acc_ref[...] * (1.0 / nt)                       # mean over templates
        # class_embedding / class_embedding.norm()
        cinv = lax.rsqrt(jnp.maximum(jnp.sum(cls * cls, axis=-1, keepdims=True),
                                     1e-36))
        o_ref[...] = (cls * cinv).astype(o_ref.dtype)


def zeroshot_text_weights(templates_tcf, w_txt_pad, *, tc):
    T, C_pad, F_pad = templates_tcf.shape
    D = w_txt_pad.shape[1]
    assert C_pad % tc == 0
    return pl.pallas_call(
        _text_weights_kernel,
        out_shape=jax.ShapeDtypeStruct((C_pad, D), jnp.bfloat16),
        grid_spec=pltpu.PrefetchScalarGridSpec(
            num_scalar_prefetch=0,
            grid=(C_pad // tc, T),
            in_specs=[
                pl.BlockSpec((1, tc, F_pad), lambda c, t: (t, c, 0)),
                pl.BlockSpec((F_pad, D), lambda c, t: (0, 0)),
            ],
            out_specs=pl.BlockSpec((tc, D), lambda c, t: (c, 0)),
            scratch_shapes=[pltpu.VMEM((tc, D), jnp.float32)],
        ),
        compiler_params=pltpu.CompilerParams(
            dimension_semantics=("parallel", "arbitrary"),
            vmem_limit_bytes=_VMEM_LIMIT_BYTES),
    )(templates_tcf, w_txt_pad)


# ----------------------------------------------------------------------------
# Kernel B: fused image encoder + logits.
#   Grid: (B_pad // tb, Fin_pad // tk), K innermost reduction.
#   x:   (B_pad, Fin_pad) bf16   flattened image
#   w:   (Fin_pad, D)     bf16
#   txt: (D, C_pad)       bf16   pre-transposed text embeddings (small, resident)
#   out: (B_pad, C_pad)   f32    lane-dense logits
# ----------------------------------------------------------------------------
def _encode_logits_kernel(x_ref, w_ref, txt_ref, o_ref, acc_ref):
    k = pl.program_id(1)

    @pl.when(k == 0)
    def _():
        acc_ref[...] = jnp.zeros_like(acc_ref)

    acc_ref[...] += jnp.dot(x_ref[...], w_ref[...],
                            preferred_element_type=jnp.float32)

    @pl.when(k == pl.num_programs(1) - 1)
    def _():
        # Epilogue: logits tile = img_emb @ txt. bf16 x bf16 on the MXU
        # (single-pass), f32 accumulation; tiny vs. the streamed weight bytes.
        o_ref[...] = jnp.dot(acc_ref[...].astype(jnp.bfloat16), txt_ref[...],
                             preferred_element_type=jnp.float32
                             ).astype(o_ref.dtype)


def encode_and_classify(x_flat, w_img_prep, txt_dc, *, tb, tk):
    B_pad, Fin_pad = x_flat.shape
    D = w_img_prep.shape[1]
    C_pad = txt_dc.shape[1]
    assert B_pad % tb == 0 and Fin_pad % tk == 0
    return pl.pallas_call(
        _encode_logits_kernel,
        out_shape=jax.ShapeDtypeStruct((B_pad, C_pad), jnp.float32),
        grid_spec=pltpu.PrefetchScalarGridSpec(
            num_scalar_prefetch=0,
            grid=(B_pad // tb, Fin_pad // tk),
            in_specs=[
                pl.BlockSpec((tb, tk), lambda b, k: (b, k)),
                pl.BlockSpec((tk, D), lambda b, k: (k, 0)),
                pl.BlockSpec((D, C_pad), lambda b, k: (0, 0)),
            ],
            out_specs=pl.BlockSpec((tb, C_pad), lambda b, k: (b, 0)),
            scratch_shapes=[pltpu.VMEM((tb, D), jnp.float32)],
        ),
        compiler_params=pltpu.CompilerParams(
            dimension_semantics=("parallel", "arbitrary"),
            vmem_limit_bytes=_VMEM_LIMIT_BYTES),
    )(x_flat, w_img_prep, txt_dc)


# ----------------------------------------------------------------------------
# Wrappers: padding / dtype / layout plumbing only.
# Text weights and image-encoder weights are prepared ONCE and reused across
# per-image forward calls (the biggest wall-clock win from the review).
# ----------------------------------------------------------------------------
def _image_feature_tiles(Fin: int):
    Fin_r = _round_up(Fin, 128)
    tk = min(Fin_r, 2048)                       # large K tile (review: 1024-2048)
    Fin_pad = _round_up(Fin_r, tk)
    return tk, Fin_pad


@jax.jit
def prepare_text_weights(templates_3d, w_txt):
    """(C, T, F) templates + (F, D) text proj -> (D, C_pad) bf16 unit-norm weights."""
    C, T, F = templates_3d.shape
    tc = 128
    C_pad = _round_up(C, tc)
    F_pad = _round_up(F, 128)
    tpl = jnp.pad(templates_3d.astype(jnp.bfloat16),
                  ((0, C_pad - C), (0, 0), (0, F_pad - F)))
    tpl = jnp.transpose(tpl, (1, 0, 2))                          # (T, C_pad, F_pad)
    w = jnp.pad(w_txt.astype(jnp.bfloat16), ((0, F_pad - F), (0, 0)))
    txt_cd = zeroshot_text_weights(tpl, w, tc=tc)                # (C_pad, D) bf16
    return txt_cd.T                                              # (D, C_pad) bf16


@jax.jit
def prepare_image_weights(w_img):
    """(Fin, D) image proj -> K-padded bf16 (Fin_pad, D)."""
    Fin, D = w_img.shape
    _, Fin_pad = _image_feature_tiles(Fin)
    return jnp.pad(w_img.astype(jnp.bfloat16), ((0, Fin_pad - Fin), (0, 0)))


@functools.partial(jax.jit, static_argnames=("num_classes",))
def zeroshot_classify(image, w_img_prep, txt_dc, *, num_classes):
    """Per-image forward: flatten -> fused encode+logits kernel -> slice padding."""
    B = image.shape[0]
    Fin_pad = w_img_prep.shape[0]
    tk = min(Fin_pad, 2048)
    tb = min(256, _round_up(max(B, 1), 16))     # 256-tall MXU on v6e/v7x
    B_pad = _round_up(B, tb)

    x = image.reshape(B, -1).astype(jnp.bfloat16)
    Fin = x.shape[1]
    x = jnp.pad(x, ((0, B_pad - B), (0, Fin_pad - Fin)))

    logits = encode_and_classify(x, w_img_prep, txt_dc, tb=tb, tk=tk)
    return logits[:B, :num_classes]


def zeroshot_classifier_forward(image, w_img, templates_3d, w_txt):
    """One-shot convenience wrapper matching the PyTorch module's forward()."""
    txt_dc = prepare_text_weights(templates_3d, w_txt)
    w_prep = prepare_image_weights(w_img)
    return zeroshot_classify(image, w_prep, txt_dc,
                             num_classes=templates_3d.shape[0])


def reference_forward(image, w_img, templates_3d, w_txt):
    """Pure-JAX f32 reference mirroring the PyTorch module."""
    B = image.shape[0]
    img_emb = image.reshape(B, -1) @ w_img                       # (B, D)
    weights = []
    for c in range(templates_3d.shape[0]):
        e = templates_3d[c] @ w_txt                              # (T, D)
        n = jnp.linalg.norm(e, axis=-1, keepdims=True)
        e = e / jnp.maximum(n, 1e-12)
        ce = e.mean(axis=0)
        ce = ce / jnp.linalg.norm(ce)
        weights.append(ce)
    txt = jnp.stack(weights, axis=1)                             # (D, C)
    return img_emb @ txt


if __name__ == "__main__":
    key = jax.random.PRNGKey(0)
    k_img, k_wimg, k_tpl, k_wtxt = jax.random.split(key, 4)

    B, Cin, H, W = 2, 4, 16, 16          # image: NCHW
    D = 32                               # embedding dim
    num_classes, T, F = 3, 5, 16         # classes, templates/class, template feat dim

    image = jax.random.normal(k_img, (B, Cin, H, W), dtype=jnp.float32)
    w_img = 0.02 * jax.random.normal(k_wimg, (Cin * H * W, D), dtype=jnp.float32)
    templates_3d = jax.random.normal(k_tpl, (num_classes, T, F), dtype=jnp.float32)
    w_txt = 0.05 * jax.random.normal(k_wtxt, (F, D), dtype=jnp.float32)

    # Hoisted (computed once, reused for every image batch):
    txt_dc = prepare_text_weights(templates_3d, w_txt)           # (D, C_pad) bf16
    w_prep = prepare_image_weights(w_img)                        # (Fin_pad, D) bf16

    # Per-image forward (single fused kernel launch):
    logits = zeroshot_classify(image, w_prep, txt_dc, num_classes=num_classes)
    logits = jax.block_until_ready(logits)

    ref = reference_forward(image, w_img, templates_3d, w_txt)
    assert logits.shape == (B, num_classes)
    # Matmul operands (and the logits epilogue) are bf16 with f32 accumulation;
    # observed error vs. the f32 reference is O(1e-3)-O(1e-2) at these shapes.
    assert jnp.allclose(logits, ref, atol=3e-2, rtol=3e-2), (
        logits, ref, jnp.max(jnp.abs(logits - ref)))

    print("KERNEL_OK")
</pallas_src>

<mosaic_0001>
module attributes {stable_mosaic.version = 11 : i64} {
  func.func @_text_weights_kernel(%arg0: i32, %arg1: i32, %arg2: memref<1x128x128xbf16, #tpu.memory_space<vmem>>, %arg3: memref<128x32xbf16, #tpu.memory_space<vmem>>, %arg4: memref<128x32xbf16, #tpu.memory_space<vmem>>, %arg5: memref<128x32xf32, #tpu.memory_space<vmem>>) attributes {dimension_semantics = [#tpu.dimension_semantics<parallel>, #tpu.dimension_semantics<arbitrary>], iteration_bounds = array<i64: 1, 5>, scalar_prefetch = 0 : i64, scratch_operands = 1 : i64, tpu.core_type = #tpu.core_type<tc>, window_params = [{transform_indices = @transform_0, window_bounds = array<i64: 1, 128, 128>}, {pipeline_mode = #tpu.pipeline_mode<synchronous>, transform_indices = @transform_1, window_bounds = array<i64: 128, 32>}, {transform_indices = @transform_2, window_bounds = array<i64: 128, 32>}]} {
    %c0_i32 = arith.constant 0 : i32
    %0 = arith.cmpi eq, %arg1, %c0_i32 : i32
    %1 = arith.extui %0 : i1 to i32
    %c0_i32_0 = arith.constant 0 : i32
    %2 = arith.cmpi ne, %1, %c0_i32_0 : i32
    scf.if %2 {
      %cst_12 = arith.constant 0.000000e+00 : f32
      %21 = vector.broadcast %cst_12 : f32 to vector<128x32xf32>
      %c0_13 = arith.constant 0 : index
      %c0_14 = arith.constant 0 : index
      %22 = vector.load %arg5[%c0_13, %c0_14] : memref<128x32xf32, #tpu.memory_space<vmem>>, vector<128x32xf32>
      tpu.vector_store %arg5[%c0_13, %c0_14], %21 {strides = array<i32>} : memref<128x32xf32, #tpu.memory_space<vmem>>, vector<128x32xf32>,
    } else {
    }
    %c0 = arith.constant 0 : index
    %c0_1 = arith.constant 0 : index
    %c0_2 = arith.constant 0 : index
    %3 = vector.load %arg2[%c0, %c0_1, %c0_2] : memref<1x128x128xbf16, #tpu.memory_space<vmem>>, vector<1x128x128xbf16>
    %4 = vector.shape_cast %3 : vector<1x128x128xbf16> to vector<128x128xbf16>
    %c0_3 = arith.constant 0 : index
    %c0_4 = arith.constant 0 : index
    %5 = vector.load %arg3[%c0_3, %c0_4] : memref<128x32xbf16, #tpu.memory_space<vmem>>, vector<128x32xbf16>
    %cst = arith.constant dense<0.000000e+00> : vector<128x32xf32>
    %6 = tpu.matmul %4, %5, %cst {dimension_numbers = #tpu.dot_dimension_numbers<[1], [0], [0], [1], [0, 0, 1, 1], [], []>} : vector<128x128xbf16>, vector<128x32xbf16>, vector<128x32xf32> -> vector<128x32xf32>
    %7 = arith.mulf %6, %6 : vector<128x32xf32>
    %cst_5 = arith.constant dense<0.000000e+00> : vector<128xf32>
    %8 = vector.multi_reduction <add>, %7, %cst_5 [1] : vector<128x32xf32> to vector<128xf32>
    %9 = vector.shape_cast %8 : vector<128xf32> to vector<128x1xf32>
    %cst_6 = arith.constant 1.000000e-24 : f32
    %10 = vector.broadcast %cst_6 : f32 to vector<128x1xf32>
    %11 = arith.maximumf %9, %10 : vector<128x1xf32>
    %12 = math.rsqrt %11 : vector<128x1xf32>
    %c0_7 = arith.constant 0 : index
    %c0_8 = arith.constant 0 : index
    %13 = vector.load %arg5[%c0_7, %c0_8] : memref<128x32xf32, #tpu.memory_space<vmem>>, vector<128x32xf32>
    %14 = vector.broadcast %12 : vector<128x1xf32> to vector<128x32xf32>
    %15 = arith.mulf %6, %14 : vector<128x32xf32>
    %16 = arith.addf %13, %15 : vector<128x32xf32>
    %c0_9 = arith.constant 0 : index
    %c0_10 = arith.constant 0 : index
    %17 = vector.load %arg5[%c0_9, %c0_10] : memref<128x32xf32, #tpu.memory_space<vmem>>, vector<128x32xf32>
    tpu.vector_store %arg5[%c0_9, %c0_10], %16 {strides = array<i32>} : memref<128x32xf32, #tpu.memory_space<vmem>>, vector<128x32xf32>,
    %c4_i32 = arith.constant 4 : i32
    %18 = arith.cmpi eq, %arg1, %c4_i32 : i32
    %19 = arith.extui %18 : i1 to i32
    %c0_i32_11 = arith.constant 0 : i32
    %20 = arith.cmpi ne, %19, %c0_i32_11 : i32
    scf.if %20 {
      %c0_12 = arith.constant 0 : index
      %c0_13 = arith.constant 0 : index
      %21 = vector.load %arg5[%c0_12, %c0_13] : memref<128x32xf32, #tpu.memory_space<vmem>>, vector<128x32xf32>
      %cst_14 = arith.constant 2.000000e-01 : f32
      %22 = vector.broadcast %cst_14 : f32 to vector<128x32xf32>
      %23 = arith.mulf %21, %22 : vector<128x32xf32>
      %24 = arith.mulf %23, %23 : vector<128x32xf32>
      %cst_15 = arith.constant dense<0.000000e+00> : vector<128xf32>
      %25 = vector.multi_reduction <add>, %24, %cst_15 [1] : vector<128x32xf32> to vector<128xf32>
      %26 = vector.shape_cast %25 : vector<128xf32> to vector<128x1xf32>
      %cst_16 = arith.constant 1.000000e-36 : f32
      %27 = vector.broadcast %cst_16 : f32 to vector<128x1xf32>
      %28 = arith.maximumf %26, %27 : vector<128x1xf32>
      %29 = math.rsqrt %28 : vector<128x1xf32>
      %30 = vector.broadcast %29 : vector<128x1xf32> to vector<128x32xf32>
      %31 = arith.mulf %23, %30 : vector<128x32xf32>
      %32 = arith.truncf %31 : vector<128x32xf32> to vector<128x32xbf16>
      %c0_17 = arith.constant 0 : index
      %c0_18 = arith.constant 0 : index
      %33 = vector.load %arg4[%c0_17, %c0_18] : memref<128x32xbf16, #tpu.memory_space<vmem>>, vector<128x32xbf16>
      tpu.vector_store %arg4[%c0_17, %c0_18], %32 {strides = array<i32>} : memref<128x32xbf16, #tpu.memory_space<vmem>>, vector<128x32xbf16>,
    } else {
    }
    return
  }
  func.func @transform_0(%arg0: i32, %arg1: i32) -> (i32, i32, i32) {
    %c0_i32 = arith.constant 0 : i32
    %c0_i32_0 = arith.constant 0 : i32
    return %arg1, %arg0, %c0_i32 : i32, i32, i32
  }
  func.func @transform_1(%arg0: i32, %arg1: i32) -> (i32, i32) {
    %c0_i32 = arith.constant 0 : i32
    %c0_i32_0 = arith.constant 0 : i32
    %c0_i32_1 = arith.constant 0 : i32
    return %c0_i32, %c0_i32_0 : i32, i32
  }
  func.func @transform_2(%arg0: i32, %arg1: i32) -> (i32, i32) {
    %c0_i32 = arith.constant 0 : i32
    %c0_i32_0 = arith.constant 0 : i32
    return %arg0, %c0_i32 : i32, i32
  }
}

</mosaic_0001>

<bundles_post_ra>
// kernel: prepare_text_weights.1
= control target key start
LH: loop header
LB: loop body
LE: loop exit
PB: predicated region body
PF: predicated region fallthrough
CT: control target
= control target key end

     0   :  { %7 = vsyncpa [#allocation4], 0  ;;  %s1806_s0 = inlined_call_operand.hbm [shape: bf16[5,128,128], index: 0, kind: input, shape index: {}]   ;;  %s1807_s1 = inlined_call_operand.hbm [shape: bf16[128,32], index: 1, kind: input, shape index: {}]   ;;  %s1808_s2 = inlined_call_operand.hbm [shape: bf16[128,32], index: 2, kind: output, shape index: {}]  }
   0x1   :  { %9 = vsyncpa [#allocation4 + $0x1], 0 }
   0x2   :  { %10 = vsyncpa [#allocation7], 0 }
   0x3   :  { %11 = vsyncpa [#allocation5], 0  ;;  %s1365_s9 = smov 0   ;;  %s1367_s10 = smov 0  }
   0x4   :  { %s1369_s11 = smov 0   ;;  %s1371_s12 = smov 0  }
   0x5   :  { %s1373_s13 = smov 0   ;;  %s1375_s14 = smov 0  }
   0x6 LB: > { %s911_s15 = sadd.s32 4294967295, %s1340_s14   ;;  %p51_p0 = scmp.ne.s32.totalorder %s1324_s10, %s1320_s9  ;;  %s1340_s14 = sphi %s1375_s14, %s17_s14   ;;  %s1336_s13 = sphi %s1373_s13, %s1826_s13   ;;  %s1332_s12 = sphi %s1371_s12, %s1825_s12   ;;  %s1328_s11 = sphi %s1369_s11, %s1824_s11   ;;  %s1324_s10 = sphi %s1367_s10, %s1823_s10   ;;  %s1320_s9 = sphi %s1365_s9, %s1822_s9  }
   0x7   : > { %p1397_p1 = scmp.eq.s32.totalorder %s911_s15, 0  ;;  %p912_p2 = scmp.ge.s32.totalorder %s1340_s14, 1 }
   0x8   : > { %p109_p3 = scmp.lt.s32.totalorder %s1340_s14, 6  ;;  %s1342_s19 = smov [#allocation6]  }
   0x9   : > { %s1813_s16 = scalar_select %p1397_p1, 1, 0 }
   0xa   : > { %p1405_p4 = por %p1397_p1, %p51_p0  ;;  %p1409_p5 = pnand %p912_p2, %p109_p3 }
   0xb   : > { %s121_s20 = sshll.u32 %s1342_s19, 4  ;;  %s26_s22 = sadd.s32 1, %s1336_s13  ;;  %s122_s20 = int_to_ptr.vmem [resolvable:$true] %s121_s20 }
   0xc   : > { %s1814_s17 = scalar_select %p1405_p4, 1, 0 }
   0xd   : > { %s1815_s18 = scalar_select %p1409_p5, 1, 0 }
   0xe   : > { %p1050_p6 = pneg %p1409_p5  ;;  %s1198_s25 = scalar_lea.hbm %s1807_s1, 1024 }
   0xf   : > { %p1199_p8 = scmp.ne.s32.totalorder %s1807_s1, %s1198_s25  ;;  %p1205_p12 = scmp.lt.u32.totalorder %s1198_s25, %s1807_s1 }
  0x10   : > { %p1417_p7 = pnand %p1050_p6, %p1397_p1 }
  0x12   : > { %p1200_p9 = pneg %p1417_p7 }
  0x14   : > { %p1201_p10 = pnand %p1200_p9, %p1199_p8 }
  0x16   : > { %p1202_p11 = pneg %p1201_p10 }
  0x18   : > { %p1207_p13 = pnand %p1205_p12, %p1202_p11 }
  0x1a   : > { %1210 = shalt.err (!%p1207_p13)
}
  0x1b   : > { %s1211_s30 = scalar_lea.vmem %s122_s20, 1024  ;;  %p1219_p6 = scmp.lt.s32.totalorder %s122_s20, %s122_s20 }
  0x1c   : > { %p1212_p0 = scmp.ne.s32.totalorder %s122_s20, %s1211_s30  ;;  %p1220_p1 = scmp.lt.s32.totalorder %s1211_s30, %s1211_s30 }
  0x1e   : > { %p1214_p2 = pnand %p1212_p0, %p1200_p9  ;;  %p1221_p4 = por %p1220_p1, %p1219_p6 }
  0x20   : > { %p1215_p3 = pneg %p1214_p2 }
  0x22   : > { %p1222_p5 = pnand %p1221_p4, %p1215_p3 }
  0x24   : > { %1225 = shalt.err (!%p1222_p5)
}
  0x25   : > { %s1343_s3 = smov 64   ;;  %s1344_s4 = smov 4  }
  0x26   : > { %1053 = dma.hbm_to_vmem [thread:$0]  (!%p1417_p7), %s1807_s1, 1024, %s122_s20, [#allocation7], %s1343_s3, %s1343_s3, %s1344_s4  }
  0x27   : > { %p27_p1 = scmp.ge.s32.totalorder %s26_s22, 5  ;;  %s38_s7 = sadd.s32 1, %s1328_s11 }
  0x28   : > { %p45_p4 = scmp.ne.s32.totalorder %s1328_s11, %s1324_s10  ;;  %p46_p5 = scmp.eq.s32.totalorder %s1340_s14, 0 }
  0x29   : > { %s1828_s22 = smov (%p27_p1, %s26_s22), 0  ;;  %p1059_p9 = scmp.lt.s32.totalorder %s1340_s14, 5 }
  0x2a   : > { %p47_p8 = por %p46_p5, %p45_p4  ;;  %s33_s8 = ssub.s32 %s1336_s13, %s1828_s22 }
  0x2b   : > { %s135_s9 = sand.u32 1, %s1328_s11   ;;  %p36_p10 = scmp.eq.s32.totalorder %s33_s8, 0 }
  0x2c   : > { %s915_s19 = sshll.u32 %s135_s9, 6  ;;  %s959_s21 = sshll.u32 %s1336_s13, 10 }
  0x2d   : > { %s1453_s23 = scalar_select %p36_p10, %s1328_s11, %s38_s7  }
  0x2e   : > { %s1458_s20 = scalar_lea.hbm %s1806_s0, %s959_s21  ;;  %s139_s26 = scalar_lea.vmem [#allocation3], %s915_s19 }
  0x2f   : > { %s148_s27 = sshll.u32 %s139_s26, 4  ;;  %p1460_p7 = pnand %p1059_p9, %p47_p8  ;;  %s1464_s27 = int_to_ptr.vmem [resolvable:$true] %s148_s27 }
  0x30   : > { %s1466_s29 = scalar_lea.sflag [#allocation4], %s135_s9  ;;  %s1226_s30 = scalar_lea.hbm %s1458_s20, 1024 }
  0x31   : > { %p1227_p11 = scmp.ne.s32.totalorder %s1458_s20, %s1226_s30  ;;  %p1228_p12 = pneg %p1460_p7 }
  0x32   : > { %s1231_s7 = scalar_lea.hbm %s1806_s0, 5120  ;;  %p1232_p2 = scmp.lt.u32.totalorder %s1458_s20, %s1806_s0 }
  0x33   : > { %p1229_p13 = pnand %p1228_p12, %p1227_p11  ;;  %p1233_p3 = scmp.lt.u32.totalorder %s1231_s7, %s1226_s30 }
  0x34   : > { %p1235_p1 = scmp.lt.u32.totalorder %s1226_s30, %s1458_s20 }
  0x35   : > { %p1230_p0 = pneg %p1229_p13  ;;  %p1234_p6 = por %p1233_p3, %p1232_p2 }
  0x37   : > { %p1236_p4 = por %p1235_p1, %p1234_p6 }
  0x39   : > { %p1237_p5 = pnand %p1236_p4, %p1230_p0 }
  0x3b   : > { %1240 = shalt.err (!%p1237_p5)
}
  0x3c   : > { %s1241_s9 = scalar_lea.vmem %s1464_s27, 1024  ;;  %s1345_s21 = smov [#allocation3]  }
  0x3d   : > { %p1242_p8 = scmp.ne.s32.totalorder %s1464_s27, %s1241_s9  ;;  %s1246_s24 = sshll.u32 %s1345_s21, 4  ;;  %s1247_s24 = int_to_ptr.vmem [resolvable:$false] %s1246_s24 }
  0x3e   : > { %s1248_s25 = scalar_lea.vmem %s1247_s24, 2048  ;;  %p1249_p11 = scmp.lt.s32.totalorder %s1464_s27, %s1247_s24 }
  0x3f   : > { %p1244_p9 = pnand %p1242_p8, %p1228_p12  ;;  %p1250_p13 = scmp.lt.s32.totalorder %s1248_s25, %s1241_s9 }
  0x41   : > { %p1245_p10 = pneg %p1244_p9  ;;  %p1251_p2 = por %p1250_p13, %p1249_p11 }
  0x43   : > { %p1252_p3 = pnand %p1251_p2, %p1245_p10 }
  0x45   : > { %1255 = shalt.err (!%p1252_p3)
}
  0x46   : > { %1057 = dma.hbm_to_vmem [thread:$0]  (!%p1460_p7), %s1458_s20, 1024, %s1464_s27, %s1466_s29, %s1343_s3, %s1343_s3, %s1344_s4  }
  0x47   : > { %p1818_p12 = scmp.ne.s32.totalorder %s1815_s18, 0 }
  0x48   : > { %s162_s26 = sand.u32 (!%p1818_p12), 1, %s1324_s10   ;;  %p1819_p0 = scmp.ne.s32.totalorder (!%p1818_p12), %s1814_s17, 0 }
  0x49   : > { %160 = sbr.rel (%p1818_p12) target bundleno = 744 (0x2e8), region = 28  ;;  %s919_s30 = sshll.u32 (!%p1818_p12), %s162_s26, 6 }
  0x4a   : > { %s163_s5 = scalar_lea.sflag (!%p1818_p12), [#allocation4], %s162_s26  ;;  %s1500_s6 = scalar_lea.vmem (!%p1818_p12), [#allocation3], %s919_s30 }
  0x50   : > { %1307 = dma.done.wait (%p1819_p0), %s163_s5, 1024  }
  0x51   : > { %1309 = vsyncadd (%p1819_p0), %s163_s5, 4294966272  ;;  %p1820_p6 = scmp.ne.s32.totalorder %s1813_s16, 0 }
  0x53   : > { %1311 = dma.done.wait (%p1820_p6), [#allocation7], 1024  }
  0x54   : > { %1313 = vsyncadd (%p1820_p6), [#allocation7], 4294966272  ;;  %p921_p7 = scmp.ne.s32.totalorder %s1332_s12, 0 }
  0x55   : > { %vm193_vm0 = vcmask (!%p921_p7), 261120   ;;  %v1346_v0 = vmov (!%p921_p7), 0.0  }
  0x56   : > { %192 = sbr.rel (%p921_p7) target bundleno = 94 (0x5e), region = 40  ;;  %194 = vst.msk [vmem:[#allocation2] sm:$0xff] (!%p921_p7), %vm193_vm0, %v1346_v0  ;;  %195 = vst.msk [vmem:[#allocation2 + $0x8] sm:$0xff] (!%p921_p7), %vm193_vm0, %v1346_v0 }
  0x57   : > { %196 = vst.msk [vmem:[#allocation2 + $0x10] sm:$0xff] (!%p921_p7), %vm193_vm0, %v1346_v0  ;;  %197 = vst.msk [vmem:[#allocation2 + $0x18] sm:$0xff] (!%p921_p7), %vm193_vm0, %v1346_v0 }
  0x58   : > { %198 = vst.msk [vmem:[#allocation2 + $0x20] sm:$0xff] (!%p921_p7), %vm193_vm0, %v1346_v0  ;;  %199 = vst.msk [vmem:[#allocation2 + $0x28] sm:$0xff] (!%p921_p7), %vm193_vm0, %v1346_v0 }
  0x59   : > { %200 = vst.msk [vmem:[#allocation2 + $0x30] sm:$0xff] (!%p921_p7), %vm193_vm0, %v1346_v0  ;;  %201 = vst.msk [vmem:[#allocation2 + $0x38] sm:$0xff] (!%p921_p7), %vm193_vm0, %v1346_v0 }
  0x5a   : > { %202 = vst.msk [vmem:[#allocation2 + $0x40] sm:$0xff] (!%p921_p7), %vm193_vm0, %v1346_v0  ;;  %203 = vst.msk [vmem:[#allocation2 + $0x48] sm:$0xff] (!%p921_p7), %vm193_vm0, %v1346_v0 }
  0x5b   : > { %204 = vst.msk [vmem:[#allocation2 + $0x50] sm:$0xff] (!%p921_p7), %vm193_vm0, %v1346_v0  ;;  %205 = vst.msk [vmem:[#allocation2 + $0x58] sm:$0xff] (!%p921_p7), %vm193_vm0, %v1346_v0 }
  0x5c   : > { %206 = vst.msk [vmem:[#allocation2 + $0x60] sm:$0xff] (!%p921_p7), %vm193_vm0, %v1346_v0  ;;  %207 = vst.msk [vmem:[#allocation2 + $0x68] sm:$0xff] (!%p921_p7), %vm193_vm0, %v1346_v0 }
  0x5d   : > { %208 = vst.msk [vmem:[#allocation2 + $0x70] sm:$0xff] %vm193_vm0, %v1346_v0  ;;  %209 = vst.msk [vmem:[#allocation2 + $0x78] sm:$0xff] %vm193_vm0, %v1346_v0 }
  0x5e PF: > { %v1118_v1 = vld [vmem:[#allocation6] sm:$0xff]   ;;  %v1119_v2 = vld [vmem:[#allocation6 + $0x8] sm:$0xff]   ;;  %v1120_v3 = vld [vmem:[#allocation6 + $0x10] sm:$0xff]   ;;  %vm451_vm1 = vcmask 261120   ;;  %p938_p1 = scmp.ne.s32.totalorder %s1332_s12, 4 }
  0x5f   : > { %992 = vmatprep.subr.bf16.mxu0 %v1118_v1  ;;  %1024 = vmatprep.subr.bf16.mxu1 %v1118_v1  ;;  %v1121_v4 = vld [vmem:[#allocation6 + $0x18] sm:$0xff]   ;;  %v1126_v5 = vld [vmem:[%s1500_s6] sm:$0xff]   ;;  %v1123_v8 = vld [vmem:[#allocation6 + $0x28] sm:$0xff]   ;;  %vm808_vm2 = vcmask (!%p938_p1), 257024  }
  0x60   : > { %993 = vmatpush3.bf16.msra.mxu0 %v1118_v1  ;;  %1032 = vmatpush3.bf16.msra.mxu1 %v1118_v1  ;;  %v1127_v6 = vld [vmem:[%s1500_s6 + $0x20] sm:$0xff]   ;;  %v1124_v9 = vld [vmem:[#allocation6 + $0x30] sm:$0xff]   ;;  %v1125_v10 = vld [vmem:[#allocation6 + $0x38] sm:$0xff]  }
  0x61   : > { %994 = vmatprep.subr.bf16.mxu0 %v1119_v2  ;;  %1025 = vmatprep.subr.bf16.mxu1 %v1119_v2  ;;  %v1122_v7 = vld [vmem:[#allocation6 + $0x20] sm:$0xff]   ;;  %v1128_v11 = vld [vmem:[%s1500_s6 + $0x8] sm:$0xff]   ;;  %v1130_v13 = vld [vmem:[%s1500_s6 + $0x10] sm:$0xff]  }
  0x62   : > { %1008 = vmatprep.mubr.bf16.mxu0 %v1126_v5  ;;  %1016 = vmatprep.mubr.bf16.mxu1 %v1127_v6  ;;  %v1129_v12 = vld [vmem:[%s1500_s6 + $0x28] sm:$0xff]   ;;  %v1132_v14 = vld [vmem:[%s1500_s6 + $0x30] sm:$0xff]   ;;  %v1131_v15 = vld [vmem:[%s1500_s6 + $0x18] sm:$0xff]  }
  0x63   : > { %v1133_v16 = vld [vmem:[%s1500_s6 + $0x38] sm:$0xff]  }
  0x64   : > { %995 = vmatpush3.bf16.msra.mxu0 %v1119_v2  ;;  %1033 = vmatpush3.bf16.msra.mxu1 %v1119_v2 }
  0x65   : > { %996 = vmatprep.subr.bf16.mxu0 %v1120_v3  ;;  %1026 = vmatprep.subr.bf16.mxu1 %v1120_v3 }
  0x68   : > { %997 = vmatpush3.bf16.msra.mxu0 %v1120_v3  ;;  %1034 = vmatpush3.bf16.msra.mxu1 %v1120_v3 }
  0x69   : > { %998 = vmatprep.subr.bf16.mxu0 %v1121_v4  ;;  %1027 = vmatprep.subr.bf16.mxu1 %v1121_v4 }
  0x6c   : > { %999 = vmatpush3.bf16.msra.mxu0 %v1121_v4  ;;  %1035 = vmatpush3.bf16.msra.mxu1 %v1121_v4 }
  0x6d   : > { %1000 = vmatprep.subr.bf16.mxu0 %v1122_v7  ;;  %1028 = vmatprep.subr.bf16.mxu1 %v1122_v7 }
  0x70   : > { %1001 = vmatpush3.bf16.msra.mxu0 %v1122_v7  ;;  %1036 = vmatpush3.bf16.msra.mxu1 %v1122_v7 }
  0x71   : > { %1002 = vmatprep.subr.bf16.mxu0 %v1123_v8  ;;  %1029 = vmatprep.subr.bf16.mxu1 %v1123_v8 }
  0x74   : > { %1003 = vmatpush3.bf16.msra.mxu0 %v1123_v8  ;;  %1037 = vmatpush3.bf16.msra.mxu1 %v1123_v8 }
  0x75   : > { %1004 = vmatprep.subr.bf16.mxu0 %v1124_v9  ;;  %1030 = vmatprep.subr.bf16.mxu1 %v1124_v9 }
  0x78   : > { %1005 = vmatpush3.bf16.msra.mxu0 %v1124_v9  ;;  %1038 = vmatpush3.bf16.msra.mxu1 %v1124_v9 }
  0x79   : > { %1006 = vmatprep.subr.bf16.mxu0 %v1125_v10  ;;  %1031 = vmatprep.subr.bf16.mxu1 %v1125_v10 }
  0x7c   : > { %1007 = vmatpush3.bf16.msra.mxu0 %v1125_v10  ;;  %1039 = vmatpush3.bf16.msra.mxu1 %v1125_v10 }
  0x7f   : > { %1009 = vmatmul.mubr.bf16.vlgmr.msra.gmra.mrb[0].mxu0 %v1128_v11  ;;  %1017 = vmatmul.mubr.bf16.vlgmr.msra.gmra.mrb[0].mxu1 %v1129_v12 }
  0x80   : > { %1012 = vmatprep.mubr.bf16.mxu0 %v1130_v13  ;;  %1020 = vmatprep.mubr.bf16.mxu1 %v1132_v14 }
  0x87   : > { %1013 = vmatmul.mubr.bf16.gmra.mrb[4].mxu0 %v1131_v15  ;;  %1021 = vmatmul.mubr.bf16.gmra.mrb[4].mxu1 %v1133_v16  ;;  %v542_v16 = vld [vmem:[#allocation2 + $0x50] sm:$0xff] }
 0x152   : > { %v1535_v17 = vpop.f32.mrb[0].mxu0  ;;  %v1537_v18 = vpop.f32.mrb[0].mxu1 }
 0x153   : > { %v1539_v19 = vpop.f32.mrb[1].mxu0  ;;  %v1541_v20 = vpop.f32.mrb[1].mxu1  ;;  %v445_v21 = vmul.f32 %v1537_v18, %v1537_v18  ;;  %v437_v22 = vmul.f32 %v1535_v17, %v1535_v17 }
 0x154   : > { %v1547_v23 = vpop.f32.mrb[2].mxu0  ;;  %v1549_v24 = vpop.f32.mrb[2].mxu1  ;;  %v435_v25 = vmul.f32 %v1539_v19, %v1539_v19  ;;  %v443_v31 = vmul.f32 %v1541_v20, %v1541_v20 }
 0x155   : > { %v438_v26 = vmul.f32 %v1547_v23, %v1547_v23  ;;  %v1555_v27 = vpop.f32.mrb[3].mxu0  ;;  %v1557_v28 = vpop.f32.mrb[3].mxu1  ;;  %v482_v29 = vsel %vm451_vm1, %v445_v21, 0.0  ;;  %v458_v30 = vsel %vm451_vm1, %v437_v22, 0.0  ;;  %v446_v32 = vmul.f32 %v1549_v24, %v1549_v24 }
 0x156   : > { %483 = vadd.xlane.f32.xlu0 %v482_v29  ;;  %459 = vadd.xlane.f32.xlu1 %v458_v30  ;;  %v452_v33 = vsel %vm451_vm1, %v435_v25, 0.0  ;;  %v436_v41 = vmul.f32 %v1555_v27, %v1555_v27  ;;  %v444_v42 = vmul.f32 %v1557_v28, %v1557_v28  ;;  %v476_v43 = vsel %vm451_vm1, %v443_v31, 0.0  ;;  %v534_v29 = vld [vmem:[#allocation2 + $0x10] sm:$0xff] }
 0x157   : > { %v461_v34 = vsel %vm451_vm1, %v438_v26, 0.0  ;;  %v485_v44 = vsel %vm451_vm1, %v446_v32, 0.0 }
 0x158   : > { %v479_v49 = vsel %vm451_vm1, %v444_v42, 0.0  ;;  %v455_v50 = vsel %vm451_vm1, %v436_v41, 0.0  ;;  %v532_v42 = vld [vmem:[#allocation2] sm:$0xff] }
 0x15a   : > { %453 = vadd.xlane.f32.xlu0 %v452_v33  ;;  %462 = vadd.xlane.f32.xlu1 %v461_v34  ;;  %v1567_v35 = vpop.f32.mrb[4].mxu0  ;;  %v1569_v36 = vpop.f32.mrb[4].mxu1 }
 0x15b   : > { %v1571_v37 = vpop.f32.mrb[5].mxu0  ;;  %v1573_v38 = vpop.f32.mrb[5].mxu1  ;;  %v441_v47 = vmul.f32 %v1567_v35, %v1567_v35  ;;  %v449_v59 = vmul.f32 %v1569_v36, %v1569_v36 }
 0x15c   : > { %v1575_v39 = vpop.f32.mrb[6].mxu0  ;;  %v1577_v40 = vpop.f32.mrb[6].mxu1  ;;  %v439_v51 = vmul.f32 %v1571_v37, %v1571_v37  ;;  %v447_v55 = vmul.f32 %v1573_v38, %v1573_v38 }
 0x15d   : > { %v1585_v45 = vpop.f32.mrb[7].mxu0  ;;  %v1587_v46 = vpop.f32.mrb[7].mxu1  ;;  %v442_v48 = vmul.f32 %v1575_v39, %v1575_v39  ;;  %v470_v53 = vsel %vm451_vm1, %v441_v47, 0.0  ;;  %v450_v60 = vmul.f32 %v1577_v40, %v1577_v40  ;;  %v494_v63 = vsel %vm451_vm1, %v449_v59, 0.0 }
 0x15e   : > { %477 = vadd.xlane.f32.xlu0 %v476_v43  ;;  %486 = vadd.xlane.f32.xlu1 %v485_v44  ;;  %v440_v52 = vmul.f32 %v1585_v45, %v1585_v45  ;;  %v448_v56 = vmul.f32 %v1587_v46, %v1587_v46  ;;  %v464_v57 = vsel %vm451_vm1, %v439_v51, 0.0  ;;  %v488_v61 = vsel %vm451_vm1, %v447_v55, 0.0 }
 0x15f   : > { %v473_v54 = vsel %vm451_vm1, %v442_v48, 0.0  ;;  %v497_v0 = vsel %vm451_vm1, %v450_v60, 0.0 }
 0x160   : > { %v467_v58 = vsel %vm451_vm1, %v440_v52, 0.0  ;;  %v491_v62 = vsel %vm451_vm1, %v448_v56, 0.0 }
 0x162   : > { %480 = vadd.xlane.f32.xlu1 %v479_v49  ;;  %456 = vadd.xlane.f32.xlu0 %v455_v50  ;;  %v535_v49 = vld [vmem:[#allocation2 + $0x18] sm:$0xff] }
 0x166   : > { %471 = vadd.xlane.f32.xlu0 %v470_v53  ;;  %474 = vadd.xlane.f32.xlu1 %v473_v54  ;;  %v540_v54 = vld [vmem:[#allocation2 + $0x40] sm:$0xff] }
 0x16a   : > { %465 = vadd.xlane.f32.xlu0 %v464_v57  ;;  %468 = vadd.xlane.f32.xlu1 %v467_v58  ;;  %v543_v58 = vld [vmem:[#allocation2 + $0x58] sm:$0xff] }
 0x16e   : > { %489 = vadd.xlane.f32.xlu0 %v488_v61  ;;  %492 = vadd.xlane.f32.xlu1 %v491_v62 }
 0x172   : > { %495 = vadd.xlane.f32.xlu0 %v494_v63  ;;  %498 = vadd.xlane.f32.xlu1 %v497_v0  ;;  %v541_v0 = vld [vmem:[#allocation2 + $0x48] sm:$0xff] }
 0x1e3   : > { %v484_v1 = vpop.xlane.xlu0 %483  ;;  %v460_v2 = vpop.xlane.xlu1 %459 }
 0x1e4   : > { %v510_v3 = vmax.f32 %v484_v1, 1e-24  ;;  %v502_v4 = vmax.f32 %v460_v2, 1e-24 }
 0x1e6   : > { %1134 = vrsqrt.f32 %v510_v3 }
 0x1e7   : > { %1136 = vrsqrt.f32 %v502_v4  ;;  %v454_v5 = vpop.xlane.xlu0 %453  ;;  %v463_v6 = vpop.xlane.xlu1 %462  ;;  %v533_v4 = vld [vmem:[#allocation2 + $0x8] sm:$0xff] }
 0x1e8   : > { %v500_v7 = vmax.f32 %v454_v5, 1e-24  ;;  %v503_v8 = vmax.f32 %v463_v6, 1e-24 }
 0x1ea   : > { %1138 = vrsqrt.f32 %v500_v7 }
 0x1eb   : > { %1140 = vrsqrt.f32 %v503_v8  ;;  %v478_v9 = vpop.xlane.xlu0 %477  ;;  %v487_v10 = vpop.xlane.xlu1 %486 }
 0x1ec   : > { %v508_v11 = vmax.f32 %v478_v9, 1e-24  ;;  %v511_v12 = vmax.f32 %v487_v10, 1e-24  ;;  %v538_v10 = vld [vmem:[#allocation2 + $0x30] sm:$0xff] }
 0x1ee   : > { %1142 = vrsqrt.f32 %v508_v11 }
 0x1ef   : > { %1144 = vrsqrt.f32 %v511_v12  ;;  %v481_v13 = vpop.xlane.xlu1 %480  ;;  %v457_v14 = vpop.xlane.xlu0 %456 }
 0x1f0   : > { %v1135_v15 = vpop.eup %1134  ;;  %v509_v21 = vmax.f32 %v481_v13, 1e-24  ;;  %v501_v22 = vmax.f32 %v457_v14, 1e-24  ;;  %v539_v14 = vld [vmem:[#allocation2 + $0x38] sm:$0xff] }
 0x1f1   : > { %v1137_v25 = vpop.eup %1136  ;;  %v558_v26 = vmul.f32 %v1135_v15, %v1537_v18 }
 0x1f2   : > { %v550_v30 = vmul.f32 %v1137_v25, %v1535_v17  ;;  %1146 = vrsqrt.f32 %v509_v21 }
 0x1f3   : > { %v574_v31 = vadd.f32 %v558_v26, %v542_v16  ;;  %1148 = vrsqrt.f32 %v501_v22  ;;  %v472_v32 = vpop.xlane.xlu0 %471  ;;  %v475_v33 = vpop.xlane.xlu1 %474  ;;  %v536_v22 = vld [vmem:[#allocation2 + $0x20] sm:$0xff] }
 0x1f4   : > { %v1139_v34 = vpop.eup %1138  ;;  %v566_v41 = vadd.f32 %v550_v30, %v534_v29  ;;  %v506_v43 = vmax.f32 %v472_v32, 1e-24  ;;  %v507_v44 = vmax.f32 %v475_v33, 1e-24  ;;  %v537_v29 = vld [vmem:[#allocation2 + $0x28] sm:$0xff] }
 0x1f5   : > { %v1141_v47 = vpop.eup %1140  ;;  %590 = vst.msk [vmem:[#allocation2 + $0x50] sm:$0xff] %vm451_vm1, %v574_v31  ;;  %v548_v48 = vmul.f32 %v1139_v34, %v1539_v19 }
 0x1f6   : > { %582 = vst.msk [vmem:[#allocation2 + $0x10] sm:$0xff] %vm451_vm1, %v566_v41  ;;  %v551_v17 = vmul.f32 %v1141_v47, %v1547_v23  ;;  %1150 = vrsqrt.f32 %v506_v43  ;;  %v545_v41 = vld [vmem:[#allocation2 + $0x68] sm:$0xff]  ;;  %v546_v47 = vld [vmem:[#allocation2 + $0x70] sm:$0xff] }
 0x1f7   : > { %v564_v18 = vadd.f32 %v548_v48, %v532_v42  ;;  %1152 = vrsqrt.f32 %v507_v44  ;;  %v466_v50 = vpop.xlane.xlu0 %465  ;;  %v469_v51 = vpop.xlane.xlu1 %468 }
 0x1f8   : > { %v1143_v52 = vpop.eup %1142  ;;  %v567_v53 = vadd.f32 %v551_v17, %v535_v49  ;;  %v504_v55 = vmax.f32 %v466_v50, 1e-24  ;;  %v505_v56 = vmax.f32 %v469_v51, 1e-24  ;;  %v547_v49 = vld [vmem:[#allocation2 + $0x78] sm:$0xff] }
 0x1f9   : > { %v1145_v57 = vpop.eup %1144  ;;  %580 = vst.msk [vmem:[#allocation2] sm:$0xff] %vm451_vm1, %v564_v18  ;;  %v556_v19 = vmul.f32 %v1143_v52, %v1541_v20 }
 0x1fa   : > { %583 = vst.msk [vmem:[#allocation2 + $0x18] sm:$0xff] %vm451_vm1, %v567_v53  ;;  %v559_v23 = vmul.f32 %v1145_v57, %v1549_v24  ;;  %1154 = vrsqrt.f32 %v504_v55 }
 0x1fb   : > { %v572_v59 = vadd.f32 %v556_v19, %v540_v54  ;;  %1156 = vrsqrt.f32 %v505_v56  ;;  %v490_v60 = vpop.xlane.xlu0 %489  ;;  %v493_v61 = vpop.xlane.xlu1 %492 }
 0x1fc   : > { %v1147_v62 = vpop.eup %1146  ;;  %v575_v63 = vadd.f32 %v559_v23, %v543_v58  ;;  %v512_v1 = vmax.f32 %v490_v60, 1e-24  ;;  %v513_v2 = vmax.f32 %v493_v61, 1e-24 }
 0x1fd   : > { %v1149_v3 = vpop.eup %1148  ;;  %588 = vst.msk [vmem:[#allocation2 + $0x40] sm:$0xff] %vm451_vm1, %v572_v59  ;;  %v557_v20 = vmul.f32 %v1147_v62, %v1557_v28 }
 0x1fe   : > { %591 = vst.msk [vmem:[#allocation2 + $0x58] sm:$0xff] %vm451_vm1, %v575_v63  ;;  %v549_v24 = vmul.f32 %v1149_v3, %v1555_v27  ;;  %1158 = vrsqrt.f32 %v512_v1 }
 0x1ff   : > { %v573_v5 = vadd.f32 %v557_v20, %v541_v0  ;;  %1160 = vrsqrt.f32 %v513_v2  ;;  %v496_v6 = vpop.xlane.xlu0 %495  ;;  %v499_v7 = vpop.xlane.xlu1 %498 }
 0x200   : > { %v1151_v8 = vpop.eup %1150  ;;  %v565_v9 = vadd.f32 %v549_v24, %v533_v4  ;;  %v514_v11 = vmax.f32 %v496_v6, 1e-24  ;;  %v515_v12 = vmax.f32 %v499_v7, 1e-24  ;;  %v600_v50 = vld [vmem:[#allocation2] sm:$0xff] (!%p938_p1) }
 0x201   : > { %v1153_v13 = vpop.eup %1152  ;;  %589 = vst.msk [vmem:[#allocation2 + $0x48] sm:$0xff] %vm451_vm1, %v573_v5  ;;  %v554_v28 = vmul.f32 %v1151_v8, %v1567_v35  ;;  %v603_v51 = vld [vmem:[#allocation2 + $0x18] sm:$0xff] (!%p938_p1) }
 0x202   : > { %581 = vst.msk [vmem:[#allocation2 + $0x8] sm:$0xff] %vm451_vm1, %v565_v9  ;;  %v555_v27 = vmul.f32 %v1153_v13, %v1575_v39  ;;  %1162 = vrsqrt.f32 %v514_v11  ;;  %v544_v39 = vld [vmem:[#allocation2 + $0x60] sm:$0xff]  ;;  %v1652_v53 = vmul.f32 (!%p938_p1), 0.2, %v603_v51 }
 0x203   : > { %v570_v15 = vadd.f32 %v554_v28, %v538_v10  ;;  %1164 = vrsqrt.f32 %v515_v12  ;;  %v610_v28 = vld [vmem:[#allocation2 + $0x50] sm:$0xff] (!%p938_p1) }
 0x204   : > { %v1155_v16 = vpop.eup %1154  ;;  %v571_v21 = vadd.f32 %v555_v27, %v539_v14  ;;  %v635_v19 = vmul.f32 (!%p938_p1), %v1652_v53, %v1652_v53  ;;  %v608_v6 = vld [vmem:[#allocation2 + $0x40] sm:$0xff] (!%p938_p1) }
 0x205   : > { %v1157_v25 = vpop.eup %1156  ;;  %586 = vst.msk [vmem:[#allocation2 + $0x30] sm:$0xff] %vm451_vm1, %v570_v15  ;;  %v552_v26 = vmul.f32 %v1155_v16, %v1571_v37  ;;  %v1688_v12 = vmul.f32 (!%p938_p1), 0.2, %v608_v6  ;;  %v611_v13 = vld [vmem:[#allocation2 + $0x58] sm:$0xff] (!%p938_p1) }
 0x206   : > { %587 = vst.msk [vmem:[#allocation2 + $0x38] sm:$0xff] %vm451_vm1, %v571_v21  ;;  %v553_v35 = vmul.f32 %v1157_v25, %v1585_v45  ;;  %v657_v1 = vsel (!%p938_p1), %vm451_vm1, %v635_v19, 0.0  ;;  %v1698_v25 = vmul.f32 (!%p938_p1), 0.2, %v610_v28 }
 0x207   : > { %v568_v30 = vadd.f32 %v552_v26, %v536_v22  ;;  %v640_v21 = vmul.f32 (!%p938_p1), %v1688_v12, %v1688_v12  ;;  %v1696_v22 = vmul.f32 (!%p938_p1), 0.2, %v611_v13 }
 0x208   : > { %v1159_v31 = vpop.eup %1158  ;;  %v569_v32 = vadd.f32 %v553_v35, %v537_v29  ;;  %v609_v5 = vld [vmem:[#allocation2 + $0x48] sm:$0xff] (!%p938_p1) }
 0x209   : > { %v1161_v33 = vpop.eup %1160  ;;  %584 = vst.msk [vmem:[#allocation2 + $0x20] sm:$0xff] %vm451_vm1, %v568_v30  ;;  %v560_v34 = vmul.f32 %v1159_v31, %v1573_v38  ;;  %v601_v54 = vld [vmem:[#allocation2 + $0x8] sm:$0xff] (!%p938_p1)  ;;  %v1682_v8 = vmul.f32 (!%p938_p1), 0.2, %v609_v5  ;;  %v672_v31 = vsel (!%p938_p1), %vm451_vm1, %v640_v21, 0.0 }
 0x20a   : > { %585 = vst.msk [vmem:[#allocation2 + $0x28] sm:$0xff] %vm451_vm1, %v569_v32  ;;  %v561_v42 = vmul.f32 %v1161_v33, %v1587_v46  ;;  %v602_v46 = vld [vmem:[#allocation2 + $0x10] sm:$0xff] (!%p938_p1)  ;;  %v1660_v58 = vmul.f32 (!%p938_p1), 0.2, %v601_v54  ;;  %v643_v32 = vmul.f32 (!%p938_p1), %v1696_v22, %v1696_v22 }
 0x20b   : > { %v576_v37 = vadd.f32 %v560_v34, %v544_v39  ;;  %v1648_v52 = vmul.f32 (!%p938_p1), 0.2, %v602_v46  ;;  %v641_v27 = vmul.f32 (!%p938_p1), %v1682_v8, %v1682_v8  ;;  %v642_v39 = vmul.f32 (!%p938_p1), %v1698_v25, %v1698_v25 }
 0x20c   : > { %v1163_v43 = vpop.eup %1162  ;;  %v577_v44 = vadd.f32 %v561_v42, %v545_v41  ;;  %599 = sbr.rel (%p938_p1) target bundleno = 718 (0x2ce), region = 44  ;;  %v606_v61 = vld [vmem:[#allocation2 + $0x30] sm:$0xff] (!%p938_p1)  ;;  %v633_v0 = vmul.f32 (!%p938_p1), %v1660_v58, %v1660_v58 }
 0x20d   : > { %v1165_v48 = vpop.eup %1164  ;;  %592 = vst.msk [vmem:[#allocation2 + $0x60] sm:$0xff] %vm451_vm1, %v576_v37  ;;  %v562_v45 = vmul.f32 %v1163_v43, %v1569_v36  ;;  %v1650_v36 = vmul.f32 (!%p938_p1), 0.2, %v600_v50  ;;  %v634_v56 = vmul.f32 (!%p938_p1), %v1648_v52, %v1648_v52  ;;  %v607_v23 = vld [vmem:[#allocation2 + $0x38] sm:$0xff] (!%p938_p1)  ;;  %v1678_v24 = vmul.f32 (!%p938_p1), 0.2, %v606_v61 }
 0x20e   : > { %593 = vst.msk [vmem:[#allocation2 + $0x68] sm:$0xff] %vm451_vm1, %v577_v44  ;;  %v563_v17 = vmul.f32 %v1165_v48, %v1577_v40  ;;  %v1671_v2 = vmul.f32 (!%p938_p1), 0.2, %v607_v23  ;;  %v651_v3 = vsel (!%p938_p1), %vm451_vm1, %v633_v0, 0.0  ;;  %v675_v30 = vsel (!%p938_p1), %vm451_vm1, %v641_v27, 0.0 }
 0x20f   : > { %v578_v38 = vadd.f32 %v562_v45, %v546_v47  ;;  %v632_v57 = vmul.f32 (!%p938_p1), %v1650_v36, %v1650_v36  ;;  %v654_v62 = vsel (!%p938_p1), %vm451_vm1, %v634_v56, 0.0  ;;  %v638_v11 = vmul.f32 (!%p938_p1), %v1678_v24, %v1678_v24 }
 0x210   : > { %v579_v18 = vadd.f32 %v563_v17, %v547_v49  ;;  %v604_v55 = vld [vmem:[#allocation2 + $0x20] sm:$0xff] (!%p938_p1)  ;;  %655 = vadd.xlane.f32.xlu1 (!%p938_p1), %v654_v62  ;;  %v639_v7 = vmul.f32 (!%p938_p1), %v1671_v2, %v1671_v2  ;;  %v681_v37 = vsel (!%p938_p1), %vm451_vm1, %v643_v32, 0.0  ;;  %v678_v43 = vsel (!%p938_p1), %vm451_vm1, %v642_v39, 0.0 }
 0x211   : > { %594 = vst.msk [vmem:[#allocation2 + $0x70] sm:$0xff] %vm451_vm1, %v578_v38  ;;  %v605_v40 = vld [vmem:[#allocation2 + $0x28] sm:$0xff] (!%p938_p1)  ;;  %v1664_v60 = vmul.f32 (!%p938_p1), 0.2, %v604_v55  ;;  %v648_v63 = vsel (!%p938_p1), %vm451_vm1, %v632_v57, 0.0  ;;  %v666_v16 = vsel (!%p938_p1), %vm451_vm1, %v638_v11, 0.0 }
 0x212   : > { %595 = vst.msk [vmem:[#allocation2 + $0x78] sm:$0xff] %vm451_vm1, %v579_v18  ;;  %v1662_v59 = vmul.f32 (!%p938_p1), 0.2, %v605_v40  ;;  %649 = vadd.xlane.f32.xlu0 (!%p938_p1), %v648_v63  ;;  %v669_v14 = vsel (!%p938_p1), %vm451_vm1, %v639_v7, 0.0 }
 0x213   : > { %v636_v4 = vmul.f32 %v1664_v60, %v1664_v60 }
 0x214   : > { %v637_v20 = vmul.f32 %v1662_v59, %v1662_v59  ;;  %658 = vadd.xlane.f32.xlu1 %v657_v1  ;;  %v612_v26 = vld [vmem:[#allocation2 + $0x60] sm:$0xff] }
 0x215   : > { %v660_v10 = vsel %vm451_vm1, %v636_v4, 0.0  ;;  %v613_v15 = vld [vmem:[#allocation2 + $0x68] sm:$0xff]  ;;  %v1702_v35 = vmul.f32 0.2, %v612_v26 }
 0x216   : > { %652 = vadd.xlane.f32.xlu0 %v651_v3  ;;  %v663_v9 = vsel %vm451_vm1, %v637_v20, 0.0  ;;  %v1700_v29 = vmul.f32 0.2, %v613_v15 }
 0x217   : > { %v644_v42 = vmul.f32 %v1702_v35, %v1702_v35 }
 0x218   : > { %664 = vadd.xlane.f32.xlu1 %v663_v9  ;;  %v614_v34 = vld [vmem:[#allocation2 + $0x70] sm:$0xff]  ;;  %v645_v41 = vmul.f32 %v1700_v29, %v1700_v29 }
 0x219   : > { %v615_v33 = vld [vmem:[#allocation2 + $0x78] sm:$0xff]  ;;  %v1718_v47 = vmul.f32 0.2, %v614_v34  ;;  %v684_v45 = vsel %vm451_vm1, %v644_v42, 0.0 }
 0x21a   : > { %661 = vadd.xlane.f32.xlu0 %v660_v10  ;;  %v1716_v44 = vmul.f32 0.2, %v615_v33  ;;  %v687_v48 = vsel %vm451_vm1, %v645_v41, 0.0 }
 0x21b   : > { %v646_v17 = vmul.f32 %v1718_v47, %v1718_v47 }
 0x21c   : > { %670 = vadd.xlane.f32.xlu1 %v669_v14  ;;  %v647_v49 = vmul.f32 %v1716_v44, %v1716_v44 }
 0x21d   : > { %v690_v18 = vsel %vm451_vm1, %v646_v17, 0.0 }
 0x21e   : > { %667 = vadd.xlane.f32.xlu0 %v666_v16  ;;  %v693_v38 = vsel %vm451_vm1, %v647_v49, 0.0 }
 0x220   : > { %676 = vadd.xlane.f32.xlu1 %v675_v30 }
 0x222   : > { %673 = vadd.xlane.f32.xlu0 %v672_v31 }
 0x224   : > { %682 = vadd.xlane.f32.xlu1 %v681_v37 }
 0x226   : > { %679 = vadd.xlane.f32.xlu0 %v678_v43 }
 0x228   : > { %688 = vadd.xlane.f32.xlu1 %v687_v48 }
 0x22a   : > { %685 = vadd.xlane.f32.xlu0 %v684_v45 }
 0x22c   : > { %694 = vadd.xlane.f32.xlu1 %v693_v38 }
 0x22e   : > { %691 = vadd.xlane.f32.xlu0 %v690_v18 }
 0x29d   : > { %v656_v46 = vpop.xlane.xlu1 %655 }
 0x29e   : > { %v698_v51 = vmax.f32 %v656_v46, 1e-36 }
 0x29f   : > { %v650_v50 = vpop.xlane.xlu0 %649 }
 0x2a0   : > { %v696_v54 = vmax.f32 %v650_v50, 1e-36  ;;  %1166 = vrsqrt.f32 %v698_v51 }
 0x2a1   : > { %v659_v40 = vpop.xlane.xlu1 %658 }
 0x2a2   : > { %1168 = vrsqrt.f32 %v696_v54  ;;  %v699_v56 = vmax.f32 %v659_v40, 1e-36 }
 0x2a3   : > { %v653_v55 = vpop.xlane.xlu0 %652 }
 0x2a4   : > { %v697_v57 = vmax.f32 %v653_v55, 1e-36  ;;  %1170 = vrsqrt.f32 %v699_v56 }
 0x2a5   : > { %v665_v19 = vpop.xlane.xlu1 %664 }
 0x2a6   : > { %1172 = vrsqrt.f32 %v697_v57  ;;  %v701_v61 = vmax.f32 %v665_v19, 1e-36 }
 0x2a7   : > { %v662_v23 = vpop.xlane.xlu0 %661 }
 0x2a8   : > { %v700_v62 = vmax.f32 %v662_v23, 1e-36  ;;  %1174 = vrsqrt.f32 %v701_v61 }
 0x2a9   : > { %v671_v63 = vpop.xlane.xlu1 %670 }
 0x2aa   : > { %1176 = vrsqrt.f32 %v700_v62  ;;  %v1167_v1 = vpop.eup %1166  ;;  %v703_v3 = vmax.f32 %v671_v63, 1e-36 }
 0x2ab   : > { %v668_v0 = vpop.xlane.xlu0 %667  ;;  %v730_v5 = vmul.f32 %v1167_v1, %v1648_v52 }
 0x2ac   : > { %v702_v20 = vmax.f32 %v668_v0, 1e-36  ;;  %v1169_v4 = vpop.eup %1168  ;;  %1178 = vrsqrt.f32 %v703_v3 }
 0x2ad   : > { %v728_v6 = vmul.f32 %v1169_v4, %v1650_v36  ;;  %v962_v7 = vpack.c.bf16 %v730_v5, %v730_v5  ;;  %v677_v9 = vpop.xlane.xlu1 %676 }
 0x2ae   : > { %1180 = vrsqrt.f32 %v702_v20  ;;  %v1171_v11 = vpop.eup %1170  ;;  %v705_v28 = vmax.f32 %v677_v9, 1e-36 }
 0x2af   : > { %v674_v10 = vpop.xlane.xlu0 %673  ;;  %v960_v13 = vpack.c.bf16 %v728_v6, %v728_v6  ;;  %811 = vst.msk [vmem:[#allocation8 + $0x8] sm:$0xf] %vm808_vm2, %v962_v7  ;;  %v731_v15 = vmul.f32 %v1171_v11, %v1652_v53 }
 0x2b0   : > { %v704_v14 = vmax.f32 %v674_v10, 1e-36  ;;  %v1173_v27 = vpop.eup %1172  ;;  %1182 = vrsqrt.f32 %v705_v28 }
 0x2b1   : > { %809 = vst.msk [vmem:[#allocation8] sm:$0xf] %vm808_vm2, %v960_v13  ;;  %v729_v52 = vmul.f32 %v1173_v27, %v1660_v58  ;;  %v963_v36 = vpack.c.bf16 %v731_v15, %v731_v15  ;;  %v683_v16 = vpop.xlane.xlu1 %682 }
 0x2b2   : > { %1184 = vrsqrt.f32 %v704_v14  ;;  %v1175_v26 = vpop.eup %1174  ;;  %v707_v31 = vmax.f32 %v683_v16, 1e-36 }
 0x2b3   : > { %v680_v21 = vpop.xlane.xlu0 %679  ;;  %v961_v30 = vpack.c.bf16 %v729_v52, %v729_v52  ;;  %812 = vst.msk [vmem:[#allocation8 + $0xc] sm:$0xf] %vm808_vm2, %v963_v36  ;;  %v733_v33 = vmul.f32 %v1175_v26, %v1662_v59 }
 0x2b4   : > { %v706_v32 = vmax.f32 %v680_v21, 1e-36  ;;  %v1177_v39 = vpop.eup %1176  ;;  %1186 = vrsqrt.f32 %v707_v31 }
 0x2b5   : > { %810 = vst.msk [vmem:[#allocation8 + $0x4] sm:$0xf] %vm808_vm2, %v961_v30  ;;  %v732_v53 = vmul.f32 %v1177_v39, %v1664_v60  ;;  %v965_v58 = vpack.c.bf16 %v733_v33, %v733_v33  ;;  %v689_v34 = vpop.xlane.xlu1 %688 }
 0x2b6   : > { %1188 = vrsqrt.f32 %v706_v32  ;;  %v1179_v42 = vpop.eup %1178  ;;  %v709_v43 = vmax.f32 %v689_v34, 1e-36 }
 0x2b7   : > { %v686_v41 = vpop.xlane.xlu0 %685  ;;  %v964_v37 = vpack.c.bf16 %v732_v53, %v732_v53  ;;  %814 = vst.msk [vmem:[#allocation8 + $0x14] sm:$0xf] %vm808_vm2, %v965_v58  ;;  %v735_v49 = vmul.f32 %v1179_v42, %v1671_v2 }
 0x2b8   : > { %v708_v48 = vmax.f32 %v686_v41, 1e-36  ;;  %v1181_v45 = vpop.eup %1180  ;;  %1190 = vrsqrt.f32 %v709_v43 }
 0x2b9   : > { %813 = vst.msk [vmem:[#allocation8 + $0x10] sm:$0xf] %vm808_vm2, %v964_v37  ;;  %v734_v59 = vmul.f32 %v1181_v45, %v1678_v24  ;;  %v967_v60 = vpack.c.bf16 %v735_v49, %v735_v49  ;;  %v695_v17 = vpop.xlane.xlu1 %694 }
 0x2ba   : > { %1192 = vrsqrt.f32 %v708_v48  ;;  %v1183_v18 = vpop.eup %1182  ;;  %v711_v50 = vmax.f32 %v695_v17, 1e-36 }
 0x2bb   : > { %v692_v38 = vpop.xlane.xlu0 %691  ;;  %v966_v46 = vpack.c.bf16 %v734_v59, %v734_v59  ;;  %816 = vst.msk [vmem:[#allocation8 + $0x1c] sm:$0xf] %vm808_vm2, %v967_v60  ;;  %v737_v40 = vmul.f32 %v1183_v18, %v1682_v8 }
 0x2bc   : > { %v710_v51 = vmax.f32 %v692_v38, 1e-36  ;;  %v1185_v54 = vpop.eup %1184  ;;  %1194 = vrsqrt.f32 %v711_v50 }
 0x2bd   : > { %815 = vst.msk [vmem:[#allocation8 + $0x18] sm:$0xf] %vm808_vm2, %v966_v46  ;;  %v736_v2 = vmul.f32 %v1185_v54, %v1688_v12  ;;  %v969_v24 = vpack.c.bf16 %v737_v40, %v737_v40 }
 0x2be   : > { %1196 = vrsqrt.f32 %v710_v51  ;;  %v1187_v55 = vpop.eup %1186 }
 0x2bf   : > { %v968_v56 = vpack.c.bf16 %v736_v2, %v736_v2  ;;  %818 = vst.msk [vmem:[#allocation8 + $0x24] sm:$0xf] %vm808_vm2, %v969_v24  ;;  %v739_v19 = vmul.f32 %v1187_v55, %v1696_v22 }
 0x2c0   : > { %v1189_v57 = vpop.eup %1188 }
 0x2c1   : > { %817 = vst.msk [vmem:[#allocation8 + $0x20] sm:$0xf] %vm808_vm2, %v968_v56  ;;  %v738_v23 = vmul.f32 %v1189_v57, %v1698_v25  ;;  %v971_v61 = vpack.c.bf16 %v739_v19, %v739_v19 }
 0x2c2   : > { %v1191_v8 = vpop.eup %1190 }
 0x2c3   : > { %v970_v62 = vpack.c.bf16 %v738_v23, %v738_v23  ;;  %820 = vst.msk [vmem:[#allocation8 + $0x2c] sm:$0xf] %vm808_vm2, %v971_v61  ;;  %v741_v12 = vmul.f32 %v1191_v8, %v1700_v29 }
 0x2c4   : > { %v1193_v63 = vpop.eup %1192 }
 0x2c5   : > { %819 = vst.msk [vmem:[#allocation8 + $0x28] sm:$0xf] %vm808_vm2, %v970_v62  ;;  %v740_v0 = vmul.f32 %v1193_v63, %v1702_v35  ;;  %v973_v1 = vpack.c.bf16 %v741_v12, %v741_v12 }
 0x2c6   : > { %v1195_v3 = vpop.eup %1194 }
 0x2c7   : > { %v972_v20 = vpack.c.bf16 %v740_v0, %v740_v0  ;;  %822 = vst.msk [vmem:[#allocation8 + $0x34] sm:$0xf] %vm808_vm2, %v973_v1  ;;  %v743_v25 = vmul.f32 %v1195_v3, %v1716_v44 }
 0x2c8   : > { %v1197_v22 = vpop.eup %1196 }
 0x2c9   : > { %821 = vst.msk [vmem:[#allocation8 + $0x30] sm:$0xf] %vm808_vm2, %v972_v20  ;;  %v742_v4 = vmul.f32 %v1197_v22, %v1718_v47  ;;  %v975_v5 = vpack.c.bf16 %v743_v25, %v743_v25 }
 0x2cb   : > { %v974_v6 = vpack.c.bf16 %v742_v4, %v742_v4  ;;  %824 = vst.msk [vmem:[#allocation8 + $0x3c] sm:$0xf] %vm808_vm2, %v975_v5 }
 0x2cd   : > { %823 = vst.msk [vmem:[#allocation8 + $0x38] sm:$0xf] %vm808_vm2, %v974_v6 }
 0x2ce PF: > { %p1762_p4 = scmp.eq.s32.totalorder %s911_s15, 4  ;;  %s1347_s16 = smov [#allocation8]  }
 0x2cf   : > { %s834_s17 = sshll.u32 %s1347_s16, 4  ;;  %s835_s17 = int_to_ptr.vmem [resolvable:$true] %s834_s17 }
 0x2d0   : > { %s1256_s18 = scalar_lea.vmem %s835_s17, 1024  ;;  %p1263_p10 = scmp.lt.s32.totalorder %s835_s17, %s835_s17 }
 0x2d1   : > { %p1257_p5 = scmp.ne.s32.totalorder %s835_s17, %s1256_s18  ;;  %p1264_p11 = scmp.lt.s32.totalorder %s1256_s18, %s1256_s18 }
 0x2d3   : > { %p1258_p8 = pnand %p1257_p5, %p1762_p4  ;;  %p1265_p13 = por %p1264_p11, %p1263_p10 }
 0x2d5   : > { %p1259_p9 = pneg %p1258_p8 }
 0x2d7   : > { %p1266_p2 = pnand %p1265_p13, %p1259_p9 }
 0x2d9   : > { %1269 = shalt.err (!%p1266_p2)
}
 0x2da   : > { %s1270_s15 = scalar_lea.hbm %s1808_s2, 1024 }
 0x2db   : > { %p1271_p3 = scmp.ne.s32.totalorder %s1808_s2, %s1270_s15  ;;  %p1276_p6 = scmp.lt.u32.totalorder %s1270_s15, %s1808_s2 }
 0x2dd   : > { %p1272_p12 = pnand %p1271_p3, %p1762_p4 }
 0x2df   : > { %p1273_p0 = pneg %p1272_p12 }
 0x2e1   : > { %p1278_p7 = pnand %p1276_p6, %p1273_p0 }
 0x2e3   : > { %1281 = shalt.err (!%p1278_p7)
}
 0x2e4   : > { %s1348_s7 = smov 64   ;;  %s1349_s8 = smov 4  }
 0x2e5   : > { %1047 = dma.vmem_to_hbm [thread:$0]  (%p1762_p4), %s835_s17, 1024, %s1808_s2, [#allocation5], %s1348_s7, %s1348_s7, %s1349_s8  }
 0x2e6   : > { %1315 = dma.done.wait (%p1762_p4), [#allocation5], 1024  }
 0x2e7   : > { %1317 = vsyncadd (%p1762_p4), [#allocation5], 4294966272 }
 0x2e8 PF: > { %s17_s14 = sadd.s32 1, %s1340_s14   ;;  %s1822_s9 = smov %s1324_s10 }
 0x2e9   : > { %p14_p1 = scmp.ge.s32.totalorder %s17_s14, 7   ;;  %s1823_s10 = smov %s1328_s11 }
 0x2ea   : > { %s1824_s11 = smov %s1453_s23  ;;  %s1825_s12 = smov %s1336_s13 }
 0x2eb   : > { %s1826_s13 = smov %s1828_s22  ;;  %16 = sbr.rel (!%p14_p1) target bundleno = 6 (0x6), region = 78 }
 0x2f2   :  { %850 = vsyncpa [#allocation4], 1 }
 0x2f3   :  { %852 = vsyncpa [#allocation4 + $0x1], 1 }
 0x2f4   :  { %853 = vsyncpa [#allocation7], 1 }
 0x2f5   :  { %854 = vsyncpa [#allocation5], 1 }
 0x2f6   :  { %856 = vsyncpa [#allocation5 + $0x1], 1 }

</bundles_post_ra>
